<compile_context>
chip_gen: v7x
topology: tpu7x:2x2x1
jax: 0.10.0
libtpu: 0.0.40
codegen_flags: <defaults>
</compile_context>

<pallas_src>
import jax
import jax.numpy as jnp
from jax.experimental import pallas as pl
from jax.experimental.pallas import tpu as pltpu


# ----------------------------------------------------------------------------
# Pallas kernel: one grid step = one chunk of T timesteps.
# ----------------------------------------------------------------------------
def lstm_controller_kernel(x_ref, h0_ref, c0_ref, wg_ref, wh_ref, b_ref,
                           logits_ref, hout_ref, cout_ref, hseq_ref):
    chunk = pl.program_id(0)
    B, T, D = x_ref.shape
    H = h0_ref.shape[-1]
    GW = 4 * H                       # fused gate width (128 for H=32)
    A_pad = logits_ref.shape[-1]     # lane-dense head width (128)

    # Seed the resident h/c carry (held in the constant-index output blocks).
    @pl.when(chunk == 0)
    def _():
        hout_ref[...] = h0_ref[...]
        cout_ref[...] = c0_ref[...]

    # Hoisted per-chunk weight loads and bias broadcasts (JAX does not CSE
    # broadcast_in_dim, so keep these outside the timestep loop).
    w_gate = wg_ref[...]                                     # (D+H, 4H) bf16
    w_head = wh_ref[...]                                     # (H, A_pad) bf16
    b_gate = jnp.broadcast_to(b_ref[0:1, :GW], (B, GW))      # (B, 4H)   f32
    b_head = jnp.broadcast_to(b_ref[1:2, :A_pad], (T * B, A_pad))

    h = hout_ref[...]                # (B, H) f32 carry from previous chunk
    c = cout_ref[...]                # (B, H) f32

    for tt in range(T):              # static unroll over the time chunk
        # One fused gate matmul per step: [x_t | h] @ [Wx; Wh]  (bf16 -> f32).
        xh = jnp.concatenate([x_ref[:, tt, :], h],
                             axis=-1).astype(jnp.bfloat16)   # (B, D+H)
        pre = (jnp.dot(xh, w_gate, preferred_element_type=jnp.float32)
               + b_gate)                                     # (B, 4H) f32
        # Gate order packed as (i, f, o, g): one sigmoid slab + one tanh.
        sig = jax.nn.sigmoid(pre[:, :3 * H])
        i_g = sig[:, 0:H]
        f_g = sig[:, H:2 * H]
        o_g = sig[:, 2 * H:3 * H]
        g_g = jnp.tanh(pre[:, 3 * H:])
        c = f_g * c + i_g * g_g
        h = o_g * jnp.tanh(c)
        # Static-slice store of this step's hidden state (no stack relayout).
        hseq_ref[tt * B:(tt + 1) * B, :] = h.astype(jnp.bfloat16)

    # Single batched action-head matmul per chunk, lane-dense 128-wide store.
    logits_ref[...] = (jnp.dot(hseq_ref[...], w_head,
                               preferred_element_type=jnp.float32) + b_head)

    # Persist carry; written back to HBM once (constant index map).
    hout_ref[...] = h
    cout_ref[...] = c


# ----------------------------------------------------------------------------
# Wrapper.
# ----------------------------------------------------------------------------
def _round_up(x, m):
    return ((x + m - 1) // m) * m


def _pick_time_chunk(seq_len: int) -> int:
    """Whole sequence in one grid step when S<=64 (overhead-bound regime);
    otherwise the largest of {64,32,16,8} that divides S."""
    if seq_len <= 64:
        return seq_len
    for cand in (64, 32, 16, 8):
        if seq_len % cand == 0:
            return cand
    # TODO(synk): very long sequences with no nice divisor fully unroll in one
    #             chunk; padding the time axis would be cleaner.
    return seq_len


@jax.jit
def controller_rnn_forward(x, hidden, params):
    """x: (B, S, D) f32.  hidden: (h0, c0), each (1, B, H).
    Returns (action_logits, (h_n, c_n)) matching the PyTorch module:
    action_logits is (B, A) when S == 1, else (B, S, A)."""
    h0, c0 = hidden
    B, S, D = x.shape
    H = h0.shape[-1]
    A = params["_b_head"].shape[0]
    A_pad = params["w_head"].shape[-1]

    t_chunk = _pick_time_chunk(S)
    num_chunks = S // t_chunk

    out_shapes = (
        jax.ShapeDtypeStruct((S * B, A_pad), jnp.float32),   # logits slab
        jax.ShapeDtypeStruct((B, H), jnp.float32),           # h_n
        jax.ShapeDtypeStruct((B, H), jnp.float32),           # c_n
    )

    grid_spec = pltpu.PrefetchScalarGridSpec(
        num_scalar_prefetch=0,
        grid=(num_chunks,),
        in_specs=[
            pl.BlockSpec((B, t_chunk, D), lambda c: (0, c, 0)),      # x chunk
            pl.BlockSpec((B, H), lambda c: (0, 0)),                  # h0
            pl.BlockSpec((B, H), lambda c: (0, 0)),                  # c0
            pl.BlockSpec(params["w_gate"].shape, lambda c: (0, 0)),  # [Wx;Wh] bf16
            pl.BlockSpec(params["w_head"].shape, lambda c: (0, 0)),  # head W bf16
            pl.BlockSpec(params["b_pack"].shape, lambda c: (0, 0)),  # biases f32
        ],
        out_specs=[
            pl.BlockSpec((t_chunk * B, A_pad), lambda c: (c, 0)),    # logits
            pl.BlockSpec((B, H), lambda c: (0, 0)),                  # h carry
            pl.BlockSpec((B, H), lambda c: (0, 0)),                  # c carry
        ],
        scratch_shapes=[pltpu.VMEM((t_chunk * B, H), jnp.bfloat16)],
    )

    logits_flat, h_n, c_n = pl.pallas_call(
        lstm_controller_kernel,
        out_shape=out_shapes,
        grid_spec=grid_spec,
        # Sequential time recurrence: the chunk axis MUST stay "arbitrary".
        compiler_params=pltpu.CompilerParams(
            dimension_semantics=("arbitrary",)),
    )(x, h0.reshape(B, H), c0.reshape(B, H),
      params["w_gate"], params["w_head"], params["b_pack"])

    # Rows of logits_flat are ordered (t, b); undo + drop lane padding.
    logits = logits_flat.reshape(S, B, A_pad).transpose(1, 0, 2)[:, :, :A]
    # PyTorch: action_logits = action_head(output.squeeze(1))
    action_logits = logits[:, 0, :] if S == 1 else logits
    new_hidden = (h_n.reshape(1, B, H), c_n.reshape(1, B, H))
    return action_logits, new_hidden


# ----------------------------------------------------------------------------
# Deterministic parameter init (PyTorch-style, uniform(-1/sqrt(H), 1/sqrt(H))).
# ----------------------------------------------------------------------------
def init_params(key, input_dim, hidden_dim, num_actions):
    D, H, A = input_dim, hidden_dim, num_actions
    k = 1.0 / jnp.sqrt(jnp.float32(H))
    keys = jax.random.split(key, 6)
    # nn.LSTM parameters (num_layers = 1), PyTorch gate order i, f, g, o.
    w_ih = jax.random.uniform(keys[0], (4 * H, D), jnp.float32, -k, k)
    w_hh = jax.random.uniform(keys[1], (4 * H, H), jnp.float32, -k, k)
    b_ih = jax.random.uniform(keys[2], (4 * H,), jnp.float32, -k, k)
    b_hh = jax.random.uniform(keys[3], (4 * H,), jnp.float32, -k, k)
    # nn.Linear(hidden_dim, num_actions)
    w_head = jax.random.uniform(keys[4], (A, H), jnp.float32, -k, k)
    b_head = jax.random.uniform(keys[5], (A,), jnp.float32, -k, k)

    def reorder(m):  # (4H, X): PyTorch (i, f, g, o) -> kernel (i, f, o, g)
        return jnp.concatenate([m[0:H], m[H:2 * H], m[3 * H:4 * H],
                                m[2 * H:3 * H]], axis=0)

    # Fused gate weights: rows = [Wx ; Wh], columns = (i, f, o, g) * H.
    w_gate = jnp.concatenate([reorder(w_ih).T, reorder(w_hh).T], axis=0)
    b_gate = reorder((b_ih + b_hh)[:, None])[:, 0]                 # (4H,)

    A_pad = _round_up(A, 128)
    WW = max(4 * H, A_pad)
    w_head_p = jnp.zeros((H, A_pad), jnp.float32).at[:, :A].set(w_head.T)
    b_pack = jnp.zeros((2, WW), jnp.float32)
    b_pack = b_pack.at[0, :4 * H].set(b_gate)
    b_pack = b_pack.at[1, :A].set(b_head)

    return {
        # Kernel layouts (weights bf16 for native MXU; biases f32).
        "w_gate": w_gate.astype(jnp.bfloat16),     # (D+H, 4H)
        "w_head": w_head_p.astype(jnp.bfloat16),   # (H, A_pad)
        "b_pack": b_pack,                          # (2, max(4H, A_pad))
        # Raw copies for the pure-JAX (f32) reference.
        "_w_ih": w_ih, "_w_hh": w_hh, "_b_ih": b_ih, "_b_hh": b_hh,
        "_w_head": w_head, "_b_head": b_head,
    }


def reference_forward(x, hidden, params):
    """Pure-JAX f32 reference mirroring torch.nn.LSTM(batch_first=True) + Linear."""
    h = hidden[0][0]
    c = hidden[1][0]
    H = h.shape[-1]
    outs = []
    for t in range(x.shape[1]):
        x_t = x[:, t, :]
        gates = (x_t @ params["_w_ih"].T + h @ params["_w_hh"].T
                 + params["_b_ih"] + params["_b_hh"])
        i = jax.nn.sigmoid(gates[:, 0:H])
        f = jax.nn.sigmoid(gates[:, H:2 * H])
        g = jnp.tanh(gates[:, 2 * H:3 * H])
        o = jax.nn.sigmoid(gates[:, 3 * H:4 * H])
        c = f * c + i * g
        h = o * jnp.tanh(c)
        outs.append(h)
    out = jnp.stack(outs, axis=1)
    out = out[:, 0, :] if x.shape[1] == 1 else out
    logits = out @ params["_w_head"].T + params["_b_head"]
    return logits, (h[None], c[None])


if __name__ == "__main__":
    B, D, H, A = 2, 20, 32, 10
    key = jax.random.PRNGKey(0)
    pkey, xkey, x2key, hkey, ckey = jax.random.split(key, 5)
    params = init_params(pkey, D, H, A)

    # --- Canonical usage: seq == 1, zero initial hidden (init_hidden) ---
    x = jax.random.normal(xkey, (B, 1, D), dtype=jnp.float32)
    hidden = (jnp.zeros((1, B, H), jnp.float32), jnp.zeros((1, B, H), jnp.float32))

    action_logits, new_hidden = controller_rnn_forward(x, hidden, params)
    jax.block_until_ready(action_logits)
    jax.block_until_ready(new_hidden)

    ref_logits, (ref_h, ref_c) = reference_forward(x, hidden, params)
    assert action_logits.shape == (B, A)
    assert new_hidden[0].shape == (1, B, H) and new_hidden[1].shape == (1, B, H)
    # bf16 MXU operands -> loosened tolerances (gate math stays f32).
    assert jnp.allclose(action_logits, ref_logits, atol=1e-2, rtol=1e-2)
    assert jnp.allclose(new_hidden[0], ref_h, atol=1e-2, rtol=1e-2)
    assert jnp.allclose(new_hidden[1], ref_c, atol=1e-2, rtol=1e-2)

    # --- Longer sequence: exercises the multi-chunk carry (3 chunks of 32) ---
    S2 = 96
    x2 = jax.random.normal(x2key, (B, S2, D), dtype=jnp.float32)
    hidden2 = (0.1 * jax.random.normal(hkey, (1, B, H), dtype=jnp.float32),
               0.1 * jax.random.normal(ckey, (1, B, H), dtype=jnp.float32))

    logits2, hid2 = controller_rnn_forward(x2, hidden2, params)
    jax.block_until_ready(logits2)
    ref_logits2, (ref_h2, ref_c2) = reference_forward(x2, hidden2, params)
    assert logits2.shape == (B, S2, A)
    assert jnp.allclose(logits2, ref_logits2, atol=3e-2, rtol=3e-2)
    assert jnp.allclose(hid2[0], ref_h2, atol=3e-2, rtol=3e-2)
    assert jnp.allclose(hid2[1], ref_c2, atol=3e-2, rtol=3e-2)

    print("KERNEL_OK")
</pallas_src>

<mosaic_0001>
module attributes {stable_mosaic.version = 11 : i64} {
  func.func @lstm_controller_kernel(%arg0: i32, %arg1: memref<2x1x20xf32, #tpu.memory_space<vmem>>, %arg2: memref<2x32xf32, #tpu.memory_space<vmem>>, %arg3: memref<2x32xf32, #tpu.memory_space<vmem>>, %arg4: memref<52x128xbf16, #tpu.memory_space<vmem>>, %arg5: memref<32x128xbf16, #tpu.memory_space<vmem>>, %arg6: memref<2x128xf32, #tpu.memory_space<vmem>>, %arg7: memref<2x128xf32, #tpu.memory_space<vmem>>, %arg8: memref<2x32xf32, #tpu.memory_space<vmem>>, %arg9: memref<2x32xf32, #tpu.memory_space<vmem>>, %arg10: memref<2x32xbf16, #tpu.memory_space<vmem>>) attributes {dimension_semantics = [#tpu.dimension_semantics<arbitrary>], iteration_bounds = array<i64: 1>, scalar_prefetch = 0 : i64, scratch_operands = 1 : i64, tpu.core_type = #tpu.core_type<tc>, window_params = [{transform_indices = @transform_0, window_bounds = array<i64: 2, 1, 20>}, {pipeline_mode = #tpu.pipeline_mode<synchronous>, transform_indices = @transform_1, window_bounds = array<i64: 2, 32>}, {pipeline_mode = #tpu.pipeline_mode<synchronous>, transform_indices = @transform_2, window_bounds = array<i64: 2, 32>}, {pipeline_mode = #tpu.pipeline_mode<synchronous>, transform_indices = @transform_3, window_bounds = array<i64: 52, 128>}, {pipeline_mode = #tpu.pipeline_mode<synchronous>, transform_indices = @transform_4, window_bounds = array<i64: 32, 128>}, {pipeline_mode = #tpu.pipeline_mode<synchronous>, transform_indices = @transform_5, window_bounds = array<i64: 2, 128>}, {transform_indices = @transform_6, window_bounds = array<i64: 2, 128>}, {pipeline_mode = #tpu.pipeline_mode<synchronous>, transform_indices = @transform_7, window_bounds = array<i64: 2, 32>}, {pipeline_mode = #tpu.pipeline_mode<synchronous>, transform_indices = @transform_8, window_bounds = array<i64: 2, 32>}]} {
    %c0_i32 = arith.constant 0 : i32
    %0 = arith.cmpi eq, %arg0, %c0_i32 : i32
    %1 = arith.extui %0 : i1 to i32
    %c0_i32_0 = arith.constant 0 : i32
    %2 = arith.cmpi ne, %1, %c0_i32_0 : i32
    scf.if %2 {
      %c0_26 = arith.constant 0 : index
      %c0_27 = arith.constant 0 : index
      %43 = vector.load %arg2[%c0_26, %c0_27] : memref<2x32xf32, #tpu.memory_space<vmem>>, vector<2x32xf32>
      %c0_28 = arith.constant 0 : index
      %c0_29 = arith.constant 0 : index
      %44 = vector.load %arg8[%c0_28, %c0_29] : memref<2x32xf32, #tpu.memory_space<vmem>>, vector<2x32xf32>
      tpu.vector_store %arg8[%c0_28, %c0_29], %43 {strides = array<i32>} : memref<2x32xf32, #tpu.memory_space<vmem>>, vector<2x32xf32>,
      %c0_30 = arith.constant 0 : index
      %c0_31 = arith.constant 0 : index
      %45 = vector.load %arg3[%c0_30, %c0_31] : memref<2x32xf32, #tpu.memory_space<vmem>>, vector<2x32xf32>
      %c0_32 = arith.constant 0 : index
      %c0_33 = arith.constant 0 : index
      %46 = vector.load %arg9[%c0_32, %c0_33] : memref<2x32xf32, #tpu.memory_space<vmem>>, vector<2x32xf32>
      tpu.vector_store %arg9[%c0_32, %c0_33], %45 {strides = array<i32>} : memref<2x32xf32, #tpu.memory_space<vmem>>, vector<2x32xf32>,
    } else {
    }
    %c0 = arith.constant 0 : index
    %c0_1 = arith.constant 0 : index
    %3 = vector.load %arg4[%c0, %c0_1] : memref<52x128xbf16, #tpu.memory_space<vmem>>, vector<52x128xbf16>
    %c0_2 = arith.constant 0 : index
    %c0_3 = arith.constant 0 : index
    %4 = vector.load %arg5[%c0_2, %c0_3] : memref<32x128xbf16, #tpu.memory_space<vmem>>, vector<32x128xbf16>
    %c0_4 = arith.constant 0 : index
    %c0_5 = arith.constant 0 : index
    %5 = vector.load %arg6[%c0_4, %c0_5] : memref<2x128xf32, #tpu.memory_space<vmem>>, vector<1x128xf32>
    %6 = vector.shape_cast %5 : vector<1x128xf32> to vector<1x128xf32>
    %7 = vector.broadcast %6 : vector<1x128xf32> to vector<2x128xf32>
    %c1 = arith.constant 1 : index
    %c0_6 = arith.constant 0 : index
    %8 = vector.load %arg6[%c1, %c0_6] : memref<2x128xf32, #tpu.memory_space<vmem>>, vector<1x128xf32>
    %9 = vector.shape_cast %8 : vector<1x128xf32> to vector<1x128xf32>
    %10 = vector.broadcast %9 : vector<1x128xf32> to vector<2x128xf32>
    %c0_7 = arith.constant 0 : index
    %c0_8 = arith.constant 0 : index
    %11 = vector.load %arg8[%c0_7, %c0_8] : memref<2x32xf32, #tpu.memory_space<vmem>>, vector<2x32xf32>
    %c0_9 = arith.constant 0 : index
    %c0_10 = arith.constant 0 : index
    %12 = vector.load %arg9[%c0_9, %c0_10] : memref<2x32xf32, #tpu.memory_space<vmem>>, vector<2x32xf32>
    %c0_11 = arith.constant 0 : index
    %c0_12 = arith.constant 0 : index
    %c0_13 = arith.constant 0 : index
    %13 = vector.load %arg1[%c0_11, %c0_12, %c0_13] : memref<2x1x20xf32, #tpu.memory_space<vmem>>, vector<2x1x20xf32>
    %14 = vector.shape_cast %13 : vector<2x1x20xf32> to vector<2x20xf32>
    %15 = tpu.concatenate %14, %11 in 1 : vector<2x20xf32>, vector<2x32xf32> -> vector<2x52xf32>
    %16 = arith.truncf %15 : vector<2x52xf32> to vector<2x52xbf16>
    %cst = arith.constant dense<0.000000e+00> : vector<2x128xf32>
    %17 = tpu.matmul %16, %3, %cst {dimension_numbers = #tpu.dot_dimension_numbers<[1], [0], [0], [1], [0, 0, 1, 1], [], []>} : vector<2x52xbf16>, vector<52x128xbf16>, vector<2x128xf32> -> vector<2x128xf32>
    %18 = arith.addf %17, %7 : vector<2x128xf32>
    %19 = vector.extract_strided_slice %18 {offsets = [0, 0], sizes = [2, 96], strides = [1, 1]} : vector<2x128xf32> to vector<2x96xf32>
    %20 = arith.negf %19 : vector<2x96xf32>
    %21 = math.exp %20 : vector<2x96xf32>
    %cst_14 = arith.constant 1.000000e+00 : f32
    %22 = vector.broadcast %cst_14 : f32 to vector<2x96xf32>
    %23 = arith.addf %22, %21 : vector<2x96xf32>
    %24 = arith.divf %22, %23 : vector<2x96xf32>
    %25 = vector.extract_strided_slice %24 {offsets = [0, 0], sizes = [2, 32], strides = [1, 1]} : vector<2x96xf32> to vector<2x32xf32>
    %26 = vector.extract_strided_slice %24 {offsets = [0, 32], sizes = [2, 32], strides = [1, 1]} : vector<2x96xf32> to vector<2x32xf32>
    %27 = vector.extract_strided_slice %24 {offsets = [0, 64], sizes = [2, 32], strides = [1, 1]} : vector<2x96xf32> to vector<2x32xf32>
    %28 = vector.extract_strided_slice %18 {offsets = [0, 96], sizes = [2, 32], strides = [1, 1]} : vector<2x128xf32> to vector<2x32xf32>
    %29 = math.tanh %28 : vector<2x32xf32>
    %30 = arith.mulf %26, %12 : vector<2x32xf32>
    %31 = arith.mulf %25, %29 : vector<2x32xf32>
    %32 = arith.addf %30, %31 : vector<2x32xf32>
    %33 = math.tanh %32 : vector<2x32xf32>
    %34 = arith.mulf %27, %33 : vector<2x32xf32>
    %35 = arith.truncf %34 : vector<2x32xf32> to vector<2x32xbf16>
    %c0_15 = arith.constant 0 : index
    %c0_16 = arith.constant 0 : index
    %36 = vector.load %arg10[%c0_15, %c0_16] : memref<2x32xbf16, #tpu.memory_space<vmem>>, vector<2x32xbf16>
    tpu.vector_store %arg10[%c0_15, %c0_16], %35 {strides = array<i32>} : memref<2x32xbf16, #tpu.memory_space<vmem>>, vector<2x32xbf16>,
    %c0_17 = arith.constant 0 : index
    %c0_18 = arith.constant 0 : index
    %37 = vector.load %arg10[%c0_17, %c0_18] : memref<2x32xbf16, #tpu.memory_space<vmem>>, vector<2x32xbf16>
    %cst_19 = arith.constant dense<0.000000e+00> : vector<2x128xf32>
    %38 = tpu.matmul %37, %4, %cst_19 {dimension_numbers = #tpu.dot_dimension_numbers<[1], [0], [0], [1], [0, 0, 1, 1], [], []>} : vector<2x32xbf16>, vector<32x128xbf16>, vector<2x128xf32> -> vector<2x128xf32>
    %39 = arith.addf %38, %10 : vector<2x128xf32>
    %c0_20 = arith.constant 0 : index
    %c0_21 = arith.constant 0 : index
    %40 = vector.load %arg7[%c0_20, %c0_21] : memref<2x128xf32, #tpu.memory_space<vmem>>, vector<2x128xf32>
    tpu.vector_store %arg7[%c0_20, %c0_21], %39 {strides = array<i32>} : memref<2x128xf32, #tpu.memory_space<vmem>>, vector<2x128xf32>,
    %c0_22 = arith.constant 0 : index
    %c0_23 = arith.constant 0 : index
    %41 = vector.load %arg8[%c0_22, %c0_23] : memref<2x32xf32, #tpu.memory_space<vmem>>, vector<2x32xf32>
    tpu.vector_store %arg8[%c0_22, %c0_23], %34 {strides = array<i32>} : memref<2x32xf32, #tpu.memory_space<vmem>>, vector<2x32xf32>,
    %c0_24 = arith.constant 0 : index
    %c0_25 = arith.constant 0 : index
    %42 = vector.load %arg9[%c0_24, %c0_25] : memref<2x32xf32, #tpu.memory_space<vmem>>, vector<2x32xf32>
    tpu.vector_store %arg9[%c0_24, %c0_25], %32 {strides = array<i32>} : memref<2x32xf32, #tpu.memory_space<vmem>>, vector<2x32xf32>,
    return
  }
  func.func @transform_0(%arg0: i32) -> (i32, i32, i32) {
    %c0_i32 = arith.constant 0 : i32
    %c0_i32_0 = arith.constant 0 : i32
    %c0_i32_1 = arith.constant 0 : i32
    return %c0_i32, %arg0, %c0_i32_0 : i32, i32, i32
  }
  func.func @transform_1(%arg0: i32) -> (i32, i32) {
    %c0_i32 = arith.constant 0 : i32
    %c0_i32_0 = arith.constant 0 : i32
    %c0_i32_1 = arith.constant 0 : i32
    return %c0_i32, %c0_i32_0 : i32, i32
  }
  func.func @transform_2(%arg0: i32) -> (i32, i32) {
    %c0_i32 = arith.constant 0 : i32
    %c0_i32_0 = arith.constant 0 : i32
    %c0_i32_1 = arith.constant 0 : i32
    return %c0_i32, %c0_i32_0 : i32, i32
  }
  func.func @transform_3(%arg0: i32) -> (i32, i32) {
    %c0_i32 = arith.constant 0 : i32
    %c0_i32_0 = arith.constant 0 : i32
    %c0_i32_1 = arith.constant 0 : i32
    return %c0_i32, %c0_i32_0 : i32, i32
  }
  func.func @transform_4(%arg0: i32) -> (i32, i32) {
    %c0_i32 = arith.constant 0 : i32
    %c0_i32_0 = arith.constant 0 : i32
    %c0_i32_1 = arith.constant 0 : i32
    return %c0_i32, %c0_i32_0 : i32, i32
  }
  func.func @transform_5(%arg0: i32) -> (i32, i32) {
    %c0_i32 = arith.constant 0 : i32
    %c0_i32_0 = arith.constant 0 : i32
    %c0_i32_1 = arith.constant 0 : i32
    return %c0_i32, %c0_i32_0 : i32, i32
  }
  func.func @transform_6(%arg0: i32) -> (i32, i32) {
    %c0_i32 = arith.constant 0 : i32
    %c0_i32_0 = arith.constant 0 : i32
    return %arg0, %c0_i32 : i32, i32
  }
  func.func @transform_7(%arg0: i32) -> (i32, i32) {
    %c0_i32 = arith.constant 0 : i32
    %c0_i32_0 = arith.constant 0 : i32
    %c0_i32_1 = arith.constant 0 : i32
    return %c0_i32, %c0_i32_0 : i32, i32
  }
  func.func @transform_8(%arg0: i32) -> (i32, i32) {
    %c0_i32 = arith.constant 0 : i32
    %c0_i32_0 = arith.constant 0 : i32
    %c0_i32_1 = arith.constant 0 : i32
    return %c0_i32, %c0_i32_0 : i32, i32
  }
}

</mosaic_0001>

<bundles_post_ra>
// kernel: controller_rnn_forward.1
= control target key start
LH: loop header
LB: loop body
LE: loop exit
PB: predicated region body
PF: predicated region fallthrough
CT: control target
= control target key end

     0   :  { %14 = vsyncpa [#allocation4], 0  ;;  %s597_s0 = inlined_call_operand.vmem [shape: f32[2,1,20], index: 0, kind: input, shape index: {}]   ;;  %s598_s1 = inlined_call_operand.vmem [shape: f32[2,32], index: 1, kind: input, shape index: {}]   ;;  %s599_s2 = inlined_call_operand.vmem [shape: f32[2,32], index: 2, kind: input, shape index: {}]   ;;  %s600_s3 = inlined_call_operand.hbm [shape: bf16[52,128], index: 3, kind: input, shape index: {}]   ;;  %s601_s4 = inlined_call_operand.vmem [shape: bf16[32,128], index: 4, kind: input, shape index: {}]   ;;  %s602_s5 = inlined_call_operand.vmem [shape: f32[2,128], index: 5, kind: input, shape index: {}]   ;;  %s603_s6 = inlined_call_operand.vmem [shape: f32[2,128], index: 6, kind: output, shape index: {0}]   ;;  %s604_s7 = inlined_call_operand.hbm [shape: f32[2,32], index: 7, kind: output, shape index: {1}]   ;;  %s605_s8 = inlined_call_operand.hbm [shape: f32[2,32], index: 8, kind: output, shape index: {2}]  }
   0x1   :  { %15 = vsyncpa [#allocation5], 0 }
   0x2   :  { %16 = vsyncpa [#allocation8], 0  ;;  %s458_s27 = smov [#allocation3]   ;;  %s386_s9 = scalar_lea.hbm %s600_s3, 448 }
   0x3   :  { %s28_s28 = sshll.u32 %s458_s27, 4  ;;  %p387_p0 = scmp.ne.s32.totalorder %s600_s3, %s386_s9  ;;  %s29_s28 = int_to_ptr.vmem [resolvable:$true] %s28_s28 }
   0x4   :  { %p390_p1 = scmp.lt.u32.totalorder %s386_s9, %s600_s3 }
   0x6   :  { %p392_p2 = pnand %p390_p1, %p387_p0 }
   0x8   :  { %395 = shalt.err (!%p392_p2)
}
   0x9   :  { %s396_s14 = scalar_lea.vmem %s29_s28, 448  ;;  %p401_p4 = scmp.lt.s32.totalorder %s29_s28, %s29_s28 }
   0xa   :  { %p397_p3 = scmp.ne.s32.totalorder %s29_s28, %s396_s14  ;;  %p402_p5 = scmp.lt.s32.totalorder %s396_s14, %s396_s14 }
   0xc   :  { %p403_p6 = por %p402_p5, %p401_p4 }
   0xe   :  { %p404_p7 = pnand %p403_p6, %p397_p3 }
  0x10   :  { %407 = shalt.err (!%p404_p7)
}
  0x11   :  { %s459_s15 = smov 64   ;;  %s460_s16 = smov 4  }
  0x12   :  { %34 = dma.hbm_to_vmem [thread:$0]  %s600_s3, 448, %s29_s28, [#allocation4], %s459_s15, %s459_s15, %s460_s16  }
  0x13   :  { %452 = dma.done.wait [#allocation4], 448  }
  0x14   :  { %453 = vsyncadd [#allocation4], 4294966848  ;;  %v461_v0 = vmov 0.0   ;;  %vm48_vm0 = vcmask 254976   ;;  %vm462_vm1 = vmmov 0   ;;  %v372_v2 = vld [vmem:[#allocation3] sm:$0xff]   ;;  %v83_v12 = vlaneseq }
  0x15   :  { %341 = vmatprep.subr.bf16.mxu0 %v461_v0  ;;  %353 = vmatprep.subr.bf16.mxu1 %v461_v0  ;;  %v47_v1 = vld [vmem:[%s598_s1] sm:$0x3]  ;;  %v373_v3 = vld [vmem:[#allocation3 + $0x8] sm:$0xff]   ;;  %v374_v5 = vld [vmem:[#allocation3 + $0x10] sm:$0xff]   ;;  %s463_s1 = smov 20   ;;  %vm127_vm2 = vcmask 1041408  }
  0x16   :  { %349 = vmatprep.mubr.msk.bf16.mxu0 %vm462_vm1, %v461_v0  ;;  %357 = vmatprep.mubr.msk.bf16.mxu1 %vm462_vm1, %v461_v0  ;;  %49 = vst.msk [vmem:[#allocation6] sm:$0x3] %vm48_vm0, %v47_v1  ;;  %v50_v4 = vld [vmem:[%s599_s2] sm:$0x3]  ;;  %s464_s22 = smov 32   ;;  %v84_v14 = vshrl.u32 %v83_v12, 7 }
  0x17   :  { %342 = vmatpush3.bf16.msra.mxu0 %v372_v2  ;;  %51 = vst.msk [vmem:[#allocation7] sm:$0x3] %vm48_vm0, %v50_v4  ;;  %v375_v7 = vld [vmem:[#allocation3 + $0x18] ss:$0 sps:$4 sm:$0x33]   ;;  %vm99_vm3 = vcmask 162816  }
  0x18   :  { %343 = vmatprep.subr.bf16.mxu0 %v461_v0  ;;  %v129_v8 = vsel %vm127_vm2, %v375_v7, 0  ;;  %v465_v10 = vmov 1966171168   ;;  %v75_v15 = vld [vmem:[%s597_s0] sm:$0x1]  ;;  %vm123_vm4 = vcmask 424960  }
  0x19   :  { %v81_v11 = vunpack.c.l.s4 %v465_v10  ;;  %v76_v16 = vld [vmem:[%s597_s0 + $0x1] sm:$0x1]  ;;  %v322_v24 = vld [vmem:[%s602_s5] ss:$0 sm:$0xff]  ;;  %v377_v43 = vld [vmem:[%s601_s4 + $0x8] sm:$0xff]   ;;  %s466_s9 = smov 96  }
  0x1a   :  { %v79_v17 = vcombine.low %v75_v15, %v76_v16  ;;  %v376_v42 = vld [vmem:[%s601_s4] sm:$0xff]   ;;  %vm218_vm5 = vcmask 253952   ;;  %vm233_vm6 = vcmask 261120   ;;  %s467_s4 = smov [#allocation6]   ;;  %s468_s11 = smov [#allocation7]  }
  0x1b   :  { %344 = vmatpush3.bf16.msra.mxu0 %v373_v3  ;;  %v82_v13 = vunpack.c.0.s8 %v81_v11  ;;  %354 = vmatpush3.bf16.msra.mxu1 %v376_v42  ;;  %s297_s10 = sshll.u32 %s467_s4, 4  ;;  %s307_s12 = sshll.u32 %s468_s11, 4  ;;  %s298_s10 = int_to_ptr.vmem [resolvable:$true] %s297_s10  ;;  %s308_s12 = int_to_ptr.vmem [resolvable:$true] %s307_s12 }
  0x1c   :  { %345 = vmatprep.subr.bf16.mxu0 %v461_v0  ;;  %355 = vmatprep.subr.bf16.mxu1 %v461_v0  ;;  %s408_s13 = scalar_lea.vmem %s298_s10, 32  ;;  %p413_p9 = scmp.lt.s32.totalorder %s298_s10, %s298_s10 }
  0x1d   :  { %v73_v6 = vld [vmem:[#allocation6] sm:$0x3]  ;;  %v85_v18 = vsub.s32 %v82_v13, %v84_v14  ;;  %p409_p8 = scmp.ne.s32.totalorder %s298_s10, %s408_s13  ;;  %p414_p10 = scmp.lt.s32.totalorder %s408_s13, %s408_s13 }
  0x1e   :  { %96 = vrot.lane.b32.xlu0 %v73_v6, %s463_s1  ;;  %v74_v9 = vld [vmem:[#allocation7] sm:$0x3] }
  0x1f   :  { %346 = vmatpush3.bf16.msra.mxu0 %v374_v5  ;;  %179 = vrot.lane.b32.xlu1 %v74_v9, %s464_s22  ;;  %v86_v19 = vrot.slane %v79_v17, %v85_v18  ;;  %p415_p11 = por %p414_p10, %p413_p9 }
  0x20   :  { %347 = vmatprep.subr.bf16.mxu0 %v461_v0  ;;  %356 = vmatpush3.bf16.msra.mxu1 %v377_v43 }
  0x21   :  { %v93_v20 = vrot.slane %v86_v19, %v85_v18  ;;  %p416_p12 = pnand %p415_p11, %p409_p8 }
  0x23   :  { %348 = vmatpush3.bf16.msra.mxu0 %v129_v8 }
  0x90   :  { %v97_v21 = vpop.permute.xlu0 %96 }
  0x91   :  { %v100_v22 = vsel %vm99_vm3, %v93_v20, %v97_v21  ;;  %v180_v37 = vpop.permute.xlu1 %179 }
  0x92   :  { %v101_v23 = vpack.c.bf16 %v100_v22, %v100_v22 }
  0x94   :  { %350 = vmatmul.mubr.msk.bf16.vlgmr.msra.gmra.mrb[0].mxu0 %vm123_vm4, %v101_v23 }
 0x167   :  { %v165_v25 = vpop.f32.mrb[0].mxu0 }
 0x168   :  { %v166_v26 = vadd.f32 %v322_v24, %v165_v25  ;;  %v351_v27 = vpop.f32.mrb[1].mxu0 }
 0x169   :  { %v168_v28 = vpop.f32.mrb[2].mxu0 }
 0x16a   :  { %378 = vtanh.f32 %v166_v26  ;;  %v352_v29 = vpop.f32.mrb[3].mxu0  ;;  %v329_v31 = vmul.f32 -1.442695, %v166_v26 }
 0x16c   :  { %380 = vpow2.f32 %v329_v31 }
 0x174   :  { %v379_v30 = vpop.eup %378 }
 0x175   :  { %184 = vrot.lane.b32.xlu0 %v379_v30, %s464_s22 }
 0x176   :  { %v381_v32 = vpop.eup %380 }
 0x177   :  { %v174_v33 = vadd.f32 1.0, %v381_v32 }
 0x179   :  { %382 = vrcp.f32 %v174_v33 }
 0x183   :  { %v383_v34 = vpop.eup %382 }
 0x184   :  { %v182_v38 = vmul.f32 %v383_v34, %v180_v37 }
 0x1e7   :  { %v185_v35 = vpop.permute.xlu0 %184 }
 0x1e8   :  { %v187_v36 = vmul.f32 %v383_v34, %v185_v35 }
 0x1ea   :  { %189 = vrot.lane.b32.xlu1 %v187_v36, %s464_s22 }
 0x25c   :  { %v190_v39 = vpop.permute.xlu1 %189 }
 0x25d   :  { %v192_v40 = vadd.f32 %v190_v39, %v182_v38 }
 0x25f   :  { %384 = vtanh.f32 %v192_v40 }
 0x269   :  { %v385_v41 = vpop.eup %384 }
 0x26a   :  { %195 = vrot.lane.b32.xlu0 %v385_v41, %s464_s22 }
 0x2dc   :  { %v196_v44 = vpop.permute.xlu0 %195 }
 0x2dd   :  { %v198_v45 = vmul.f32 %v383_v34, %v196_v44 }
 0x2df   :  { %v199_v46 = vpack.c.bf16 %v198_v45, %v198_v45  ;;  %279 = vrot.lane.b32.xlu0 %v198_v45, %s459_s15 }
 0x2e1   :  { %v207_v47 = vrot.slane %v199_v46, %v85_v18 }
 0x2e3   :  { %v214_v48 = vrot.slane %v207_v47, %v85_v18 }
 0x2e5   :  { %215 = vrot.lane.b32.xlu1 %v214_v48, %s459_s15 }
 0x2e9   :  { %285 = vrot.lane.b32.xlu1 %v192_v40, %s466_s9 }
 0x351   :  { %v280_v49 = vpop.permute.xlu0 %279 }
 0x352   :  { %283 = vst.msk [vmem:[#allocation6] sm:$0x3] %vm48_vm0, %v280_v49 }
 0x357   :  { %v216_v50 = vpop.permute.xlu1 %215 }
 0x358   :  { %219 = vst.msk [vmem:[#allocation2] sm:$0x1] %vm218_vm5, %v216_v50 }
 0x35b   :  { %v286_v51 = vpop.permute.xlu1 %285 }
 0x35c   :  { %288 = vst.msk [vmem:[#allocation7] sm:$0x3] %vm48_vm0, %v286_v51 }
 0x35f   :  { %v220_v52 = vld [vmem:[#allocation2] sm:$0x1] }
 0x360   :  { %358 = vmatmul.mubr.msk.bf16.vlgmr.msra.gmra.mrb[0].mxu1 %vm233_vm6, %v220_v52 }
 0x361   :  { %419 = shalt.err (!%p416_p12)
}
 0x362   :  { %s420_s16 = scalar_lea.hbm %s604_s7, 32 }
 0x363   :  { %p421_p13 = scmp.ne.s32.totalorder %s604_s7, %s420_s16  ;;  %p424_p0 = scmp.lt.u32.totalorder %s420_s16, %s604_s7 }
 0x365   :  { %p426_p1 = pnand %p424_p0, %p421_p13 }
 0x367   :  { %429 = shalt.err (!%p426_p1)
}
 0x368   :  { %300 = dma.vmem_to_hbm [thread:$0]  %s298_s10, 32, %s604_s7, [#allocation5]  }
 0x369   :  { %s430_s1 = scalar_lea.vmem %s308_s12, 32  ;;  %p435_p3 = scmp.lt.s32.totalorder %s308_s12, %s308_s12 }
 0x36a   :  { %p431_p2 = scmp.ne.s32.totalorder %s308_s12, %s430_s1  ;;  %p436_p4 = scmp.lt.s32.totalorder %s430_s1, %s430_s1 }
 0x36c   :  { %p437_p5 = por %p436_p4, %p435_p3 }
 0x36e   :  { %p438_p6 = pnand %p437_p5, %p431_p2 }
 0x370   :  { %441 = shalt.err (!%p438_p6)
}
 0x371   :  { %s442_s23 = scalar_lea.hbm %s605_s8, 32 }
 0x372   :  { %p443_p7 = scmp.ne.s32.totalorder %s605_s8, %s442_s23  ;;  %p446_p8 = scmp.lt.u32.totalorder %s442_s23, %s605_s8 }
 0x374   :  { %p448_p9 = pnand %p446_p8, %p443_p7 }
 0x376   :  { %451 = shalt.err (!%p448_p9)
}
 0x377   :  { %310 = dma.vmem_to_hbm [thread:$0]  %s308_s12, 32, %s605_s8, [#allocation8]   ;;  %v323_v53 = vld [vmem:[%s602_s5 + $0x1] ss:$0 sm:$0xff] }
 0x433   :  { %v271_v54 = vpop.f32.mrb[0].mxu1 }
 0x434   :  { %v272_v55 = vadd.f32 %v323_v53, %v271_v54  ;;  %v359_v56 = vpop.f32.mrb[1].mxu1 }
 0x435   :  { %v274_v57 = vpop.f32.mrb[2].mxu1 }
 0x436   :  { %277 = vst [vmem:[%s603_s6] sm:$0x3] %v272_v55  ;;  %v360_v58 = vpop.f32.mrb[3].mxu1 }
 0x437   :  { %454 = dma.done.wait [#allocation5], 32  }
 0x438   :  { %455 = vsyncadd [#allocation5], 4294967264 }
 0x439   :  { %456 = dma.done.wait [#allocation8], 32  }
 0x43a   :  { %457 = vsyncadd [#allocation8], 4294967264 }
 0x43b   :  { %319 = vsyncpa [#allocation4], 1 }
 0x43c   :  { %320 = vsyncpa [#allocation5], 1 }
 0x43d   :  { %321 = vsyncpa [#allocation8], 1 }

</bundles_post_ra>
